<compile_context>
chip_gen: v7x
topology: tpu7x:2x2x1
jax: 0.10.0
libtpu: 0.0.40
codegen_flags: <defaults>
</compile_context>

<pallas_src>
import functools

import jax
import jax.numpy as jnp
from jax.experimental import pallas as pl
from jax.experimental.pallas import tpu as pltpu

_LANE = 128
_SUB = 8
_TARGET_BLOCK_BYTES = 2 * 1024 * 1024  # ~2 MB per input block per buffer


def _dice_multi_kernel(yp_ref, yt_ref, out_ref, acc_ref, *,
                       tm, n_valid, card, needs_mask):
    # yp_ref / yt_ref : (1, tm, 128) label blocks (native dtype) for batch b, chunk j.
    # out_ref         : (1, 1, 1) f32 per-batch dice (written at the last chunk).
    # acc_ref         : (8, 128) int32 exact running match counts (VMEM scratch).
    j = pl.program_id(1)
    last = pl.num_programs(1) - 1

    @pl.when(j == 0)
    def _():
        acc_ref[...] = jnp.zeros_like(acc_ref)

    # Single native-dtype compare per pixel (no widen chains).
    eq = yp_ref[0] == yt_ref[0]                      # (tm, 128) bool

    def _accumulate(match_bool):
        m = jnp.where(match_bool, 1, 0)              # (tm, 128) int32
        # Grouped vreg adds into the (8,128) accumulator; no per-chunk XLU.
        acc_ref[...] += jnp.sum(m.reshape(tm // _SUB, _SUB, _LANE), axis=0)

    if needs_mask:
        # Only the last chunk can contain padded / out-of-bounds pixels.
        @pl.when(j != last)
        def _():
            _accumulate(eq)

        @pl.when(j == last)
        def _():
            row = jax.lax.broadcasted_iota(jnp.int32, (tm, _LANE), 0)
            lane = jax.lax.broadcasted_iota(jnp.int32, (tm, _LANE), 1)
            flat = (j * tm + row) * _LANE + lane
            _accumulate(eq & (flat < n_valid))
    else:
        _accumulate(eq)

    @pl.when(j == last)
    def _():
        cnt = jnp.sum(acc_ref[...], keepdims=True)                  # (1, 1) int32, exact
        dice = (2.0 * cnt.astype(jnp.float32)) / jnp.float32(card)  # (1, 1) f32
        out_ref[...] = dice.reshape(1, 1, 1)


def dice_coefficient_multi_mean(y_pred, y_true, n_class, epsilon=1e-6):
    """Equivalent of DiceCoefficientMulti(n_class, epsilon)(y_pred, y_true).

    Assumes labels lie in [0, n_class) (torch F.one_hot raises otherwise).
    """
    B = y_pred.shape[0]
    N = 1
    for d in y_pred.shape[1:]:
        N *= d

    if y_true.dtype != y_pred.dtype:
        y_true = y_true.astype(y_pred.dtype)

    # Lane-dense pixel layout: (B, rows, 128).
    rows = -(-N // _LANE)

    # Block row count sized for ~2 MB per input block in the *native* dtype.
    itemsize = jnp.dtype(y_pred.dtype).itemsize
    tm_max = max(_SUB, (_TARGET_BLOCK_BYTES // (_LANE * itemsize)) // _SUB * _SUB)

    # Keep the block's sublane dim a multiple of 8: if the whole row fits in
    # one block but isn't sublane-aligned, round rows up (tiny inputs only).
    if rows <= tm_max and rows % _SUB != 0:
        rows = -(-rows // _SUB) * _SUB
    n_arr = rows * _LANE

    yp = y_pred.reshape(B, N)
    yt = y_true.reshape(B, N)
    if n_arr != N:
        # Only taken when pixels aren't lane/sublane aligned (never for the
        # usual power-of-2 UNet shapes).  Pad values never match each other,
        # and they are additionally masked out in-kernel.
        yp = jnp.pad(yp, ((0, 0), (0, n_arr - N)), constant_values=0)
        yt = jnp.pad(yt, ((0, 0), (0, n_arr - N)), constant_values=1)
    yp = yp.reshape(B, rows, _LANE)
    yt = yt.reshape(B, rows, _LANE)

    tm = rows if rows <= tm_max else tm_max            # always a multiple of 8
    num_chunks = -(-rows // tm)
    needs_mask = (n_arr != N) or (rows % tm != 0)

    # torch: sum(onehot(p) + onehot(t) + eps) over N*n_class elements
    #      = 2*N + N*n_class*eps  for in-range labels (analytic constant).
    card = 2.0 * N + N * n_class * float(epsilon)

    kernel = functools.partial(_dice_multi_kernel, tm=tm, n_valid=N,
                               card=card, needs_mask=needs_mask)

    dice_b = pl.pallas_call(
        kernel,
        out_shape=jax.ShapeDtypeStruct((B, 1, 1), jnp.float32),
        grid=(B, num_chunks),
        in_specs=[
            pl.BlockSpec((1, tm, _LANE), lambda b, j: (b, j, 0)),
            pl.BlockSpec((1, tm, _LANE), lambda b, j: (b, j, 0)),
        ],
        out_specs=pl.BlockSpec((1, 1, 1), lambda b, j: (b, 0, 0)),
        scratch_shapes=[pltpu.VMEM((_SUB, _LANE), jnp.int32)],
        compiler_params=pltpu.CompilerParams(
            dimension_semantics=("parallel", "arbitrary"),
        ),
    )(yp, yt)

    # Tiny epilogue: mean over B per-batch dice values (B scalars).
    return jnp.mean(dice_b[:, 0, 0])


if __name__ == "__main__":
    # Small shapes consistent with the module's forward: integer label maps.
    B, H, W = 2, 16, 16
    N_CLASS = 4
    EPS = 1e-6

    key = jax.random.PRNGKey(0)
    kp, kt = jax.random.split(key)
    y_pred = jax.random.randint(kp, (B, H, W), 0, N_CLASS, dtype=jnp.int32)
    y_true = jax.random.randint(kt, (B, H, W), 0, N_CLASS, dtype=jnp.int32)

    dice = dice_coefficient_multi_mean(y_pred, y_true, N_CLASS, EPS)
    jax.block_until_ready(dice)

    # Pure-JAX reference (mirrors the torch code) for a sanity check.
    def _ref(yp, yt):
        p = jax.nn.one_hot(yp, N_CLASS, dtype=jnp.float32).reshape(B, -1)
        t = jax.nn.one_hot(yt, N_CLASS, dtype=jnp.float32).reshape(B, -1)
        inter = (2.0 * p * t).sum(axis=1)
        card = (p + t + EPS).sum(axis=1)
        return (inter / card).mean()

    ref = _ref(y_pred, y_true)
    assert jnp.allclose(dice, ref, atol=1e-5, rtol=1e-5), (dice, ref)
    print("KERNEL_OK")
</pallas_src>

<mosaic_0001>
module attributes {stable_mosaic.version = 11 : i64} {
  func.func @_dice_multi_kernel(%arg0: i32, %arg1: i32, %arg2: memref<1x8x128xi32, #tpu.memory_space<vmem>>, %arg3: memref<1x8x128xi32, #tpu.memory_space<vmem>>, %arg4: memref<1x1x1xf32, #tpu.memory_space<vmem>>, %arg5: memref<8x128xi32, #tpu.memory_space<vmem>>) attributes {dimension_semantics = [#tpu.dimension_semantics<parallel>, #tpu.dimension_semantics<arbitrary>], iteration_bounds = array<i64: 2, 1>, scalar_prefetch = 0 : i64, scratch_operands = 1 : i64, tpu.core_type = #tpu.core_type<tc>, window_params = [{transform_indices = @transform_0, window_bounds = array<i64: 1, 8, 128>}, {transform_indices = @transform_1, window_bounds = array<i64: 1, 8, 128>}, {transform_indices = @transform_2, window_bounds = array<i64: 1, 1, 1>}]} {
    %c0_i32 = arith.constant 0 : i32
    %0 = arith.cmpi eq, %arg1, %c0_i32 : i32
    %1 = arith.extui %0 : i1 to i32
    %c0_i32_0 = arith.constant 0 : i32
    %2 = arith.cmpi ne, %1, %c0_i32_0 : i32
    scf.if %2 {
      %c0_i32_12 = arith.constant 0 : i32
      %17 = vector.broadcast %c0_i32_12 : i32 to vector<8x128xi32>
      %c0_13 = arith.constant 0 : index
      %c0_14 = arith.constant 0 : index
      %18 = vector.load %arg5[%c0_13, %c0_14] : memref<8x128xi32, #tpu.memory_space<vmem>>, vector<8x128xi32>
      tpu.vector_store %arg5[%c0_13, %c0_14], %17 {strides = array<i32>} : memref<8x128xi32, #tpu.memory_space<vmem>>, vector<8x128xi32>,
    } else {
    }
    %c0 = arith.constant 0 : index
    %c0_1 = arith.constant 0 : index
    %c0_2 = arith.constant 0 : index
    %3 = vector.load %arg2[%c0, %c0_1, %c0_2] : memref<1x8x128xi32, #tpu.memory_space<vmem>>, vector<1x8x128xi32>
    %4 = vector.shape_cast %3 : vector<1x8x128xi32> to vector<8x128xi32>
    %c0_3 = arith.constant 0 : index
    %c0_4 = arith.constant 0 : index
    %c0_5 = arith.constant 0 : index
    %5 = vector.load %arg3[%c0_3, %c0_4, %c0_5] : memref<1x8x128xi32, #tpu.memory_space<vmem>>, vector<1x8x128xi32>
    %6 = vector.shape_cast %5 : vector<1x8x128xi32> to vector<8x128xi32>
    %7 = arith.cmpi eq, %4, %6 : vector<8x128xi32>
    %c0_i32_6 = arith.constant 0 : i32
    %8 = arith.cmpi ne, %arg1, %c0_i32_6 : i32
    %9 = arith.extui %8 : i1 to i32
    %c0_i32_7 = arith.constant 0 : i32
    %10 = arith.cmpi ne, %9, %c0_i32_7 : i32
    scf.if %10 {
      %c1_i32 = arith.constant 1 : i32
      %c0_i32_12 = arith.constant 0 : i32
      %17 = vector.broadcast %c1_i32 : i32 to vector<8x128xi32>
      %18 = vector.broadcast %c0_i32_12 : i32 to vector<8x128xi32>
      %19 = arith.select %7, %17, %18 : vector<8x128xi1>, vector<8x128xi32>
      %c0_13 = arith.constant 0 : index
      %c0_14 = arith.constant 0 : index
      %20 = vector.load %arg5[%c0_13, %c0_14] : memref<8x128xi32, #tpu.memory_space<vmem>>, vector<8x128xi32>
      %21 = vector.shape_cast %19 : vector<8x128xi32> to vector<1x8x128xi32>
      %cst = arith.constant dense<0> : vector<8x128xi32>
      %22 = vector.multi_reduction <add>, %21, %cst [0] : vector<1x8x128xi32> to vector<8x128xi32>
      %23 = arith.addi %20, %22 : vector<8x128xi32>
      %c0_15 = arith.constant 0 : index
      %c0_16 = arith.constant 0 : index
      %24 = vector.load %arg5[%c0_15, %c0_16] : memref<8x128xi32, #tpu.memory_space<vmem>>, vector<8x128xi32>
      tpu.vector_store %arg5[%c0_15, %c0_16], %23 {strides = array<i32>} : memref<8x128xi32, #tpu.memory_space<vmem>>, vector<8x128xi32>,
    } else {
    }
    %c0_i32_8 = arith.constant 0 : i32
    %11 = arith.cmpi eq, %arg1, %c0_i32_8 : i32
    %12 = arith.extui %11 : i1 to i32
    %c0_i32_9 = arith.constant 0 : i32
    %13 = arith.cmpi ne, %12, %c0_i32_9 : i32
    scf.if %13 {
      %17 = tpu.iota {dimensions = array<i32: 0>} : vector<8x128xi32>
      %18 = tpu.iota {dimensions = array<i32: 1>} : vector<8x128xi32>
      %c8_i32 = arith.constant 8 : i32
      %19 = arith.muli %arg1, %c8_i32 : i32
      %20 = vector.broadcast %19 : i32 to vector<8x128xi32>
      %21 = arith.addi %20, %17 : vector<8x128xi32>
      %c128_i32 = arith.constant 128 : i32
      %22 = vector.broadcast %c128_i32 : i32 to vector<8x128xi32>
      %23 = arith.muli %21, %22 : vector<8x128xi32>
      %24 = arith.addi %23, %18 : vector<8x128xi32>
      %c256_i32 = arith.constant 256 : i32
      %25 = vector.broadcast %c256_i32 : i32 to vector<8x128xi32>
      %26 = arith.cmpi slt, %24, %25 : vector<8x128xi32>
      %27 = arith.andi %7, %26 : vector<8x128xi1>
      %c1_i32 = arith.constant 1 : i32
      %c0_i32_12 = arith.constant 0 : i32
      %28 = vector.broadcast %c1_i32 : i32 to vector<8x128xi32>
      %29 = vector.broadcast %c0_i32_12 : i32 to vector<8x128xi32>
      %30 = arith.select %27, %28, %29 : vector<8x128xi1>, vector<8x128xi32>
      %c0_13 = arith.constant 0 : index
      %c0_14 = arith.constant 0 : index
      %31 = vector.load %arg5[%c0_13, %c0_14] : memref<8x128xi32, #tpu.memory_space<vmem>>, vector<8x128xi32>
      %32 = vector.shape_cast %30 : vector<8x128xi32> to vector<1x8x128xi32>
      %cst = arith.constant dense<0> : vector<8x128xi32>
      %33 = vector.multi_reduction <add>, %32, %cst [0] : vector<1x8x128xi32> to vector<8x128xi32>
      %34 = arith.addi %31, %33 : vector<8x128xi32>
      %c0_15 = arith.constant 0 : index
      %c0_16 = arith.constant 0 : index
      %35 = vector.load %arg5[%c0_15, %c0_16] : memref<8x128xi32, #tpu.memory_space<vmem>>, vector<8x128xi32>
      tpu.vector_store %arg5[%c0_15, %c0_16], %34 {strides = array<i32>} : memref<8x128xi32, #tpu.memory_space<vmem>>, vector<8x128xi32>,
    } else {
    }
    %c0_i32_10 = arith.constant 0 : i32
    %14 = arith.cmpi eq, %arg1, %c0_i32_10 : i32
    %15 = arith.extui %14 : i1 to i32
    %c0_i32_11 = arith.constant 0 : i32
    %16 = arith.cmpi ne, %15, %c0_i32_11 : i32
    scf.if %16 {
      %c0_12 = arith.constant 0 : index
      %c0_13 = arith.constant 0 : index
      %17 = vector.load %arg5[%c0_12, %c0_13] : memref<8x128xi32, #tpu.memory_space<vmem>>, vector<8x128xi32>
      %18 = vector.shape_cast %17 : vector<8x128xi32> to vector<1x8x128xi32>
      %cst = arith.constant dense<0> : vector<1xi32>
      %19 = vector.multi_reduction <add>, %18, %cst [1, 2] : vector<1x8x128xi32> to vector<1xi32>
      %20 = vector.shape_cast %19 : vector<1xi32> to vector<1x1x1xi32>
      %21 = vector.extract %20[0, 0, 0] : i32 from vector<1x1x1xi32>
      %22 = vector.broadcast %21 : i32 to vector<1x1xi32>
      %23 = arith.sitofp %22 : vector<1x1xi32> to vector<1x1xf32>
      %cst_14 = arith.constant 2.000000e+00 : f32
      %24 = vector.broadcast %cst_14 : f32 to vector<1x1xf32>
      %25 = arith.mulf %24, %23 : vector<1x1xf32>
      %cst_15 = arith.constant 512.001038 : f32
      %26 = vector.broadcast %cst_15 : f32 to vector<1x1xf32>
      %27 = arith.divf %25, %26 : vector<1x1xf32>
      %28 = vector.shape_cast %27 : vector<1x1xf32> to vector<1x1x1xf32>
      %c0_16 = arith.constant 0 : index
      %c0_17 = arith.constant 0 : index
      %c0_18 = arith.constant 0 : index
      %29 = vector.load %arg4[%c0_16, %c0_17, %c0_18] : memref<1x1x1xf32, #tpu.memory_space<vmem>>, vector<1x1x1xf32>
      tpu.vector_store %arg4[%c0_16, %c0_17, %c0_18], %28 {strides = array<i32>} : memref<1x1x1xf32, #tpu.memory_space<vmem>>, vector<1x1x1xf32>,
    } else {
    }
    return
  }
  func.func @transform_0(%arg0: i32, %arg1: i32) -> (i32, i32, i32) {
    %c0_i32 = arith.constant 0 : i32
    %c0_i32_0 = arith.constant 0 : i32
    return %arg0, %arg1, %c0_i32 : i32, i32, i32
  }
  func.func @transform_1(%arg0: i32, %arg1: i32) -> (i32, i32, i32) {
    %c0_i32 = arith.constant 0 : i32
    %c0_i32_0 = arith.constant 0 : i32
    return %arg0, %arg1, %c0_i32 : i32, i32, i32
  }
  func.func @transform_2(%arg0: i32, %arg1: i32) -> (i32, i32, i32) {
    %c0_i32 = arith.constant 0 : i32
    %c0_i32_0 = arith.constant 0 : i32
    %c0_i32_1 = arith.constant 0 : i32
    return %arg0, %c0_i32, %c0_i32_0 : i32, i32, i32
  }
}

</mosaic_0001>

<bundles_post_ra>
// kernel: tpu_custom_call.1
= control target key start
LH: loop header
LB: loop body
LE: loop exit
PB: predicated region body
PF: predicated region fallthrough
CT: control target
= control target key end

     0   :  { %7 = vsyncpa [#allocation4], 0  ;;  %s747_s0 = inlined_call_operand.hbm [shape: s32[2,8,128], index: 0, kind: input, shape index: {}]   ;;  %s748_s1 = inlined_call_operand.hbm [shape: s32[2,8,128], index: 1, kind: input, shape index: {}]   ;;  %s749_s2 = inlined_call_operand.vmem [shape: f32[2,1,1], index: 2, kind: output, shape index: {}]  }
   0x1   :  { %9 = vsyncpa [#allocation4 + $0x1], 0 }
   0x2   :  { %10 = vsyncpa [#allocation6], 0 }
   0x3   :  { %12 = vsyncpa [#allocation6 + $0x1], 0  ;;  %s575_s9 = smov 0   ;;  %s577_s10 = smov 0  }
   0x4   :  { %s579_s11 = smov 0   ;;  %s581_s12 = smov 0  }
   0x5   :  { %s583_s13 = smov 0   ;;  %s585_s14 = smov 0  }
   0x6 LB: > { %s365_s15 = sadd.s32 4294967295, %s555_s14   ;;  %s30_s16 = sadd.s32 1, %s551_s13  ;;  %s555_s14 = sphi %s585_s14, %s18_s14   ;;  %s551_s13 = sphi %s583_s13, %s763_s13   ;;  %s547_s12 = sphi %s581_s12, %s762_s12   ;;  %s543_s11 = sphi %s579_s11, %s761_s11   ;;  %s539_s10 = sphi %s577_s10, %s760_s10   ;;  %s535_s9 = sphi %s575_s9, %s759_s9  }
   0x7   : > { %p32_p0 = scmp.ge.s32.totalorder %s30_s16, 2  ;;  %s39_s17 = sadd.s32 1, %s543_s11 }
   0x8   : > { %p46_p1 = scmp.ne.s32.totalorder %s543_s11, %s539_s10  ;;  %p47_p2 = scmp.eq.s32.totalorder %s555_s14, 0 }
   0x9   : > { %s765_s16 = smov (%p32_p0, %s30_s16), 0  ;;  %p52_p4 = scmp.ne.s32.totalorder %s539_s10, %s535_s9 }
   0xa   : > { %p611_p3 = por %p47_p2, %p46_p1  ;;  %s34_s19 = ssub.s32 %s551_s13, %s765_s16 }
   0xb   : > { %p53_p5 = scmp.eq.s32.totalorder %s365_s15, 0  ;;  %p37_p6 = scmp.eq.s32.totalorder %s34_s19, 0 }
   0xc   : > { %p391_p8 = scmp.lt.s32.totalorder %s555_s14, 2  ;;  %s627_s22 = sand.u32 1, %s543_s11  }
   0xd   : > { %p618_p7 = por %p53_p5, %p52_p4  ;;  %s370_s23 = sshll.u32 %s551_s13, 7 }
   0xe   : > { %s624_s21 = scalar_select %p37_p6, %s543_s11, %s39_s17  }
   0xf   : > { %s752_s20 = scalar_select %p618_p7, 1, 0 }
  0x10   : > { %s369_s24 = sshll.u32 %s627_s22, 3  ;;  %s636_s27 = scalar_lea.hbm %s747_s0, %s370_s23 }
  0x11   : > { %s134_s28 = scalar_lea.vmem [#allocation3], %s369_s24  ;;  %p642_p9 = pnand %p391_p8, %p611_p3 }
  0x12   : > { %s142_s29 = sshll.u32 %s134_s28, 4  ;;  %s131_s3 = scalar_lea.sflag [#allocation4], %s627_s22  ;;  %s646_s29 = int_to_ptr.vmem [resolvable:$true] %s142_s29 }
  0x13   : > { %s441_s4 = scalar_lea.hbm %s636_s27, 128  ;;  %p443_p13 = pneg %p642_p9 }
  0x14   : > { %p442_p12 = scmp.ne.s32.totalorder %s636_s27, %s441_s4  ;;  %s446_s7 = scalar_lea.hbm %s747_s0, 256 }
  0x15   : > { %p447_p2 = scmp.lt.u32.totalorder %s636_s27, %s747_s0  ;;  %p448_p3 = scmp.lt.u32.totalorder %s446_s7, %s441_s4 }
  0x16   : > { %p444_p0 = pnand %p443_p13, %p442_p12  ;;  %p450_p5 = scmp.lt.u32.totalorder %s441_s4, %s636_s27 }
  0x17   : > { %p449_p4 = por %p448_p3, %p447_p2 }
  0x18   : > { %p445_p1 = pneg %p444_p0 }
  0x19   : > { %p451_p6 = por %p450_p5, %p449_p4 }
  0x1b   : > { %p452_p8 = pnand %p451_p6, %p445_p1 }
  0x1d   : > { %455 = shalt.err (!%p452_p8)
}
  0x1e   : > { %s456_s15 = scalar_lea.vmem %s646_s29, 128  ;;  %s557_s17 = smov [#allocation3]  }
  0x1f   : > { %p457_p12 = scmp.ne.s32.totalorder %s646_s29, %s456_s15  ;;  %s461_s18 = sshll.u32 %s557_s17, 4  ;;  %s462_s18 = int_to_ptr.vmem [resolvable:$false] %s461_s18 }
  0x20   : > { %s463_s19 = scalar_lea.vmem %s462_s18, 256  ;;  %p464_p11 = scmp.lt.s32.totalorder %s646_s29, %s462_s18 }
  0x21   : > { %p459_p0 = pnand %p457_p12, %p443_p13  ;;  %p465_p2 = scmp.lt.s32.totalorder %s463_s19, %s456_s15 }
  0x23   : > { %p460_p10 = pneg %p459_p0  ;;  %p466_p3 = por %p465_p2, %p464_p11 }
  0x25   : > { %p467_p4 = pnand %p466_p3, %p460_p10 }
  0x27   : > { %470 = shalt.err (!%p467_p4)
}
  0x28   : > { %387 = dma.hbm_to_vmem [thread:$0]  (!%p642_p9), %s636_s27, 128, %s646_s29, %s131_s3  }
  0x29   : > { %p754_p1 = scmp.lt.s32.totalorder %s555_s14, 3  ;;  %p755_p5 = scmp.ge.s32.totalorder %s555_s14, 1 }
  0x2a   : > { %s689_s4 = scalar_lea.hbm %s748_s1, %s370_s23  ;;  %s153_s5 = scalar_lea.vmem [#allocation5], %s369_s24 }
  0x2b   : > { %p680_p6 = pnand %p755_p5, %p754_p1  ;;  %s161_s6 = sshll.u32 %s153_s5, 4  ;;  %s162_s6 = int_to_ptr.vmem [resolvable:$true] %s161_s6 }
  0x2c   : > { %s150_s27 = scalar_lea.sflag [#allocation6], %s627_s22  ;;  %s471_s29 = scalar_lea.hbm %s689_s4, 128 }
  0x2d   : > { %s756_s25 = scalar_select %p680_p6, 1, 0 }
  0x2e   : > { %p472_p10 = scmp.ne.s32.totalorder %s689_s4, %s471_s29  ;;  %s476_s23 = scalar_lea.hbm %s748_s1, 256 }
  0x2f   : > { %p477_p12 = scmp.lt.u32.totalorder %s689_s4, %s748_s1  ;;  %p478_p0 = scmp.lt.u32.totalorder %s476_s23, %s471_s29 }
  0x30   : > { %p474_p11 = pnand %p472_p10, %p443_p13  ;;  %p480_p3 = scmp.lt.u32.totalorder %s471_s29, %s689_s4 }
  0x31   : > { %p479_p2 = por %p478_p0, %p477_p12 }
  0x32   : > { %p475_p8 = pneg %p474_p11 }
  0x33   : > { %p481_p4 = por %p480_p3, %p479_p2 }
  0x35   : > { %p482_p1 = pnand %p481_p4, %p475_p8 }
  0x37   : > { %485 = shalt.err (!%p482_p1)
}
  0x38   : > { %s486_s22 = scalar_lea.vmem %s162_s6, 128  ;;  %s558_s24 = smov [#allocation5]  }
  0x39   : > { %p487_p5 = scmp.ne.s32.totalorder %s162_s6, %s486_s22  ;;  %s491_s15 = sshll.u32 %s558_s24, 4  ;;  %s492_s15 = int_to_ptr.vmem [resolvable:$false] %s491_s15 }
  0x3a   : > { %s493_s17 = scalar_lea.vmem %s492_s15, 256  ;;  %p494_p7 = scmp.lt.s32.totalorder %s162_s6, %s492_s15 }
  0x3b   : > { %p489_p10 = pnand %p487_p5, %p443_p13  ;;  %p495_p6 = scmp.lt.s32.totalorder %s493_s17, %s486_s22 }
  0x3d   : > { %p490_p11 = pneg %p489_p10  ;;  %p496_p0 = por %p495_p6, %p494_p7 }
  0x3f   : > { %p497_p12 = pnand %p496_p0, %p490_p11 }
  0x41   : > { %500 = shalt.err (!%p497_p12)
}
  0x42   : > { %390 = dma.hbm_to_vmem [thread:$0]  (!%p642_p9), %s689_s4, 128, %s162_s6, %s150_s27  }
  0x43   : > { %p757_p8 = scmp.ne.s32.totalorder %s756_s25, 0 }
  0x44   : > { %s172_s18 = sand.u32 (!%p757_p8), 1, %s539_s10   ;;  %p758_p13 = scmp.ne.s32.totalorder (!%p757_p8), %s752_s20, 0 }
  0x45   : > { %170 = sbr.rel (%p757_p8) target bundleno = 314 (0x13a), region = 28  ;;  %s374_s19 = sshll.u32 (!%p757_p8), %s172_s18, 3 }
  0x46   : > { %s173_s26 = scalar_lea.sflag (!%p757_p8), [#allocation4], %s172_s18  ;;  %s176_s28 = scalar_lea.vmem (!%p757_p8), [#allocation3], %s374_s19 }
  0x4c   : > { %526 = dma.done.wait (%p758_p13), %s173_s26, 128  }
  0x4d   : > { %528 = vsyncadd (%p758_p13), %s173_s26, 4294967168  ;;  %s182_s5 = scalar_lea.sflag [#allocation6], %s172_s18  ;;  %s185_s29 = scalar_lea.vmem [#allocation5], %s374_s19 }
  0x4e   : > { %530 = dma.done.wait (%p758_p13), %s182_s5, 128  }
  0x4f   : > { %532 = vsyncadd (%p758_p13), %s182_s5, 4294967168  ;;  %v231_v0 = vlaneseq  ;;  %v217_v5 = vld [vmem:[%s176_s28] sm:$0xff]  ;;  %v218_v6 = vld [vmem:[%s185_s29] sm:$0xff]  ;;  %v559_v7 = vmov 0   ;;  %p209_p7 = scmp.lt.s32.totalorder %s547_s12, 1  ;;  %vm271_vm3 = vcmask 0  }
  0x50   : > { %vm219_vm0 = vcmp.eq.s32.totalorder %v217_v5, %v218_v6 }
  0x51   : > { %v232_v1 = vshrl.u32 %v231_v0, 7  ;;  %v234_v2 = vand.u32 127, %v231_v0  ;;  %s767_s12 = smov (!%p209_p7, %s547_s12), 1 }
  0x52   : > { %s211_s4 = scalar_lea.vmem %s749_s2, %s767_s12 }
  0x53   : > { %v238_v3 = vmul.u32 128, %v232_v1 }
  0x55   : > { %v239_v4 = vadd.s32 %v238_v3, %v234_v2 }
  0x57   : > { %vm240_vm1 = vcmp.lt.s32.totalorder %v239_v4, 256 }
  0x58   : > { %vm241_vm2 = vmand %vm219_vm0, %vm240_vm1 }
  0x59   : > { %v242_v8 = vsel %vm241_vm2, 1, %v559_v7 }
  0x5a   : > { %v248_v9 = vshrl.u32 %v242_v8, 16  ;;  %v247_v10 = vand.u32 65535, %v242_v8 }
  0x5c   : > { %v250_v11 = vcvt.s32.f32 %v248_v9  ;;  %v249_v12 = vcvt.s32.f32 %v247_v10 }
  0x5e   : > { %253 = vadd.xlane.f32.xlu0 %v250_v11 }
  0x62   : > { %251 = vadd.xlane.f32.xlu0 %v249_v12 }
  0xeb   : > { %v254_v13 = vpop.xlane.xlu0 %253 }
  0xec   : > { %v256_v14 = vcvt.f32.s32 %v254_v13 }
  0xee   : > { %v257_v16 = vshll.u32 %v256_v14, 16 }
  0xef   : > { %v252_v15 = vpop.xlane.xlu0 %251 }
  0xf0   : > { %v255_v17 = vcvt.f32.s32 %v252_v15 }
  0xf2   : > { %v258_v18 = vadd.s32 %v257_v16, %v255_v17 }
  0xf4   : > { %v259_v19 = vrot.slane %v258_v18, 4 }
  0xf6   : > { %v260_v20 = vadd.s32 %v259_v19, %v258_v18 }
  0xf8   : > { %v261_v21 = vrot.slane %v260_v20, 2 }
  0xfa   : > { %v262_v22 = vadd.s32 %v261_v21, %v260_v20 }
  0xfc   : > { %v263_v23 = vrot.slane %v262_v22, 1 }
  0xfe   : > { %v264_v24 = vadd.s32 %v263_v23, %v262_v22 }
 0x100   : > { %378 = vpush %v264_v24 }
 0x131   : > { %s379_s20 = spop %378 }
 0x132   : > { %v266_v25 = vstv %s379_s20 }
 0x133   : > { %v267_v26 = vcvt.s32.f32 %v266_v25 }
 0x135   : > { %v268_v27 = vmul.f32 2.0, %v267_v26 }
 0x137   : > { %v270_v28 = vmul.f32 0.001953121, %v268_v27 }
 0x139   : > { %272 = vst.msk [vmem:[%s211_s4] sm:$0x1] %vm271_vm3, %v270_v28 }
 0x13a PF: > { %s18_s14 = sadd.s32 1, %s555_s14   ;;  %s759_s9 = smov %s539_s10 }
 0x13b   : > { %p15_p9 = scmp.ge.s32.totalorder %s18_s14, 4   ;;  %s760_s10 = smov %s543_s11 }
 0x13c   : > { %s761_s11 = smov %s624_s21  ;;  %s762_s12 = smov %s551_s13 }
 0x13d   : > { %s763_s13 = smov %s765_s16  ;;  %17 = sbr.rel (!%p15_p9) target bundleno = 6 (0x6), region = 93 }
 0x144   :  { %290 = vsyncpa [#allocation4], 1 }
 0x145   :  { %292 = vsyncpa [#allocation4 + $0x1], 1 }
 0x146   :  { %293 = vsyncpa [#allocation6], 1 }
 0x147   :  { %295 = vsyncpa [#allocation6 + $0x1], 1 }

</bundles_post_ra>
